<compile_context>
chip_gen: v7x
topology: tpu7x:2x2x1
jax: 0.10.0
libtpu: 0.0.40
codegen_flags: <defaults>
</compile_context>

<pallas_src>
import jax
import jax.numpy as jnp
from jax.experimental import pallas as pl
from jax.experimental.pallas import tpu as pltpu


def _coxnet_fused_kernel(x_ref, w_ref, b_ref, o_ref):
    # x_ref: (Bt, H1)  batch on sublanes, features on lanes
    # w_ref: (1, H1)   fused weight row (broadcast over sublanes)
    # b_ref: (1, 1)    fused bias
    x = x_ref[...]
    w = w_ref[...]
    # VPU multiply + XLU lane reduce — keeps the N=1 projection off the MXU.
    r = jnp.sum(x * w, axis=-1, keepdims=True)            # (Bt, 1)
    o_ref[...] = (r + b_ref[...]).astype(o_ref.dtype)


def prepare_coxnet_params(w1, b1, w2, b2):
    """Fold layer2 ∘ layer1 into a single affine map, once at param-load time.

    w1: (H2+1, H1) torch-style, b1: (H2+1,), w2: (1, H2+1), b2: (1,).
    Exact because the reference forward has no activation between the layers:
        (x @ w1.T + b1) @ w2.T + b2 == x @ (w2 @ w1).T + (w2 @ b1 + b2)
    """
    w_fused = w2 @ w1                                        # (1, H1)
    b_fused = (w2 @ b1.reshape(-1, 1)) + b2.reshape(1, 1)    # (1, 1)
    return w_fused, b_fused


def coxnet_forward_prepared(x, k_means_label, w_fused, b_fused, *, max_bt=1024):
    """x: (B, H1); w_fused: (1, H1); b_fused: (1, 1)  ->  (B, 1)."""
    del k_means_label  # unused by the reference forward pass
    B, H1 = x.shape
    assert max_bt % 8 == 0

    if B <= max_bt:
        # Single tile: block shape equals the full array, always legal.
        bt, bp = B, B
        xp = x
    else:
        # Tile the batch; bt is a multiple of 8 so (bt, H1) blocks are legal.
        bt = max_bt
        bp = ((B + bt - 1) // bt) * bt
        xp = jnp.pad(x, ((0, bp - B), (0, 0))) if bp != B else x

    out = pl.pallas_call(
        _coxnet_fused_kernel,
        out_shape=jax.ShapeDtypeStruct((bp, 1), x.dtype),
        grid=(bp // bt,),
        in_specs=[
            pl.BlockSpec((bt, H1), lambda i: (i, 0)),   # x: streamed per tile
            pl.BlockSpec((1, H1), lambda i: (0, 0)),    # fused weight: resident
            pl.BlockSpec((1, 1), lambda i: (0, 0)),     # fused bias: resident
        ],
        out_specs=pl.BlockSpec((bt, 1), lambda i: (i, 0)),
        compiler_params=pltpu.CompilerParams(
            # Batch tiles are independent -> shard across v7x's 2 TensorCores.
            dimension_semantics=("parallel",),
            # Explicit budget; comfortably within v7x's 32 MiB scoped VMEM.
            vmem_limit_bytes=32 * 1024 * 1024,
        ),
    )(xp, w_fused, b_fused)

    return out[:B] if bp != B else out


def coxnet_forward(x, k_means_label, w1, b1, w2, b2):
    """Convenience wrapper taking raw torch-style params.

    Prefer calling prepare_coxnet_params once and reusing the fused params
    across forward calls (the fusion is pure parameter glue).
    """
    w_fused, b_fused = prepare_coxnet_params(w1, b1, w2, b2)
    return coxnet_forward_prepared(x, k_means_label, w_fused, b_fused)


def init_linear_params(key, in_features, out_features, dtype=jnp.float32):
    """Deterministic PyTorch-style Linear init: U(-1/sqrt(fan_in), +1/sqrt(fan_in))."""
    kw, kb = jax.random.split(key)
    bound = 1.0 / jnp.sqrt(jnp.asarray(in_features, dtype))
    w = jax.random.uniform(kw, (out_features, in_features), dtype,
                           minval=-bound, maxval=bound)
    b = jax.random.uniform(kb, (out_features,), dtype,
                           minval=-bound, maxval=bound)
    return w, b


if __name__ == "__main__":
    # nn_config['hidden_layers'] = [_, 32, 16]  ->  Linear(32, 17), Linear(17, 1)
    H1, H2 = 32, 16
    B = 8

    key = jax.random.PRNGKey(0)
    kx, kl, k1, k2 = jax.random.split(key, 4)

    x = jax.random.normal(kx, (B, H1), jnp.float32)
    k_means_label = jax.random.randint(kl, (B,), 0, 3)   # unused, shape-only

    w1, b1 = init_linear_params(k1, H1, H2 + 1)
    w2, b2 = init_linear_params(k2, H2 + 1, 1)

    # Fuse once at "parameter load" time, then run the kernel.
    w_fused, b_fused = prepare_coxnet_params(w1, b1, w2, b2)
    out = coxnet_forward_prepared(x, k_means_label, w_fused, b_fused)
    jax.block_until_ready(out)

    # Pure-JAX reference of the original two-layer forward.
    ref = (x @ w1.T + b1) @ w2.T + b2
    assert out.shape == (B, 1)
    assert jnp.allclose(out, ref, atol=1e-5, rtol=1e-5)

    print("KERNEL_OK")
</pallas_src>

<mosaic_0001>
module attributes {stable_mosaic.version = 11 : i64} {
  func.func @_coxnet_fused_kernel(%arg0: i32, %arg1: memref<8x32xf32, #tpu.memory_space<vmem>>, %arg2: memref<1x32xf32, #tpu.memory_space<vmem>>, %arg3: memref<1x1xf32, #tpu.memory_space<vmem>>, %arg4: memref<8x1xf32, #tpu.memory_space<vmem>>) attributes {dimension_semantics = [#tpu.dimension_semantics<parallel>], iteration_bounds = array<i64: 1>, scalar_prefetch = 0 : i64, scratch_operands = 0 : i64, tpu.core_type = #tpu.core_type<tc>, window_params = [{transform_indices = @transform_0, window_bounds = array<i64: 8, 32>}, {pipeline_mode = #tpu.pipeline_mode<synchronous>, transform_indices = @transform_1, window_bounds = array<i64: 1, 32>}, {pipeline_mode = #tpu.pipeline_mode<synchronous>, transform_indices = @transform_2, window_bounds = array<i64: 1, 1>}, {transform_indices = @transform_3, window_bounds = array<i64: 8, 1>}]} {
    %c0 = arith.constant 0 : index
    %c0_0 = arith.constant 0 : index
    %0 = vector.load %arg1[%c0, %c0_0] : memref<8x32xf32, #tpu.memory_space<vmem>>, vector<8x32xf32>
    %c0_1 = arith.constant 0 : index
    %c0_2 = arith.constant 0 : index
    %1 = vector.load %arg2[%c0_1, %c0_2] : memref<1x32xf32, #tpu.memory_space<vmem>>, vector<1x32xf32>
    %2 = vector.broadcast %1 : vector<1x32xf32> to vector<8x32xf32>
    %3 = arith.mulf %0, %2 : vector<8x32xf32>
    %cst = arith.constant dense<0.000000e+00> : vector<8xf32>
    %4 = vector.multi_reduction <add>, %3, %cst [1] : vector<8x32xf32> to vector<8xf32>
    %5 = vector.shape_cast %4 : vector<8xf32> to vector<8x1xf32>
    %c0_3 = arith.constant 0 : index
    %c0_4 = arith.constant 0 : index
    %6 = vector.load %arg3[%c0_3, %c0_4] : memref<1x1xf32, #tpu.memory_space<vmem>>, vector<1x1xf32>
    %7 = vector.broadcast %6 : vector<1x1xf32> to vector<8x1xf32>
    %8 = arith.addf %5, %7 : vector<8x1xf32>
    %c0_5 = arith.constant 0 : index
    %c0_6 = arith.constant 0 : index
    %9 = vector.load %arg4[%c0_5, %c0_6] : memref<8x1xf32, #tpu.memory_space<vmem>>, vector<8x1xf32>
    tpu.vector_store %arg4[%c0_5, %c0_6], %8 {strides = array<i32>} : memref<8x1xf32, #tpu.memory_space<vmem>>, vector<8x1xf32>,
    return
  }
  func.func @transform_0(%arg0: i32) -> (i32, i32) {
    %c0_i32 = arith.constant 0 : i32
    %c0_i32_0 = arith.constant 0 : i32
    return %arg0, %c0_i32 : i32, i32
  }
  func.func @transform_1(%arg0: i32) -> (i32, i32) {
    %c0_i32 = arith.constant 0 : i32
    %c0_i32_0 = arith.constant 0 : i32
    %c0_i32_1 = arith.constant 0 : i32
    return %c0_i32, %c0_i32_0 : i32, i32
  }
  func.func @transform_2(%arg0: i32) -> (i32, i32) {
    %c0_i32 = arith.constant 0 : i32
    %c0_i32_0 = arith.constant 0 : i32
    %c0_i32_1 = arith.constant 0 : i32
    return %c0_i32, %c0_i32_0 : i32, i32
  }
  func.func @transform_3(%arg0: i32) -> (i32, i32) {
    %c0_i32 = arith.constant 0 : i32
    %c0_i32_0 = arith.constant 0 : i32
    return %arg0, %c0_i32 : i32, i32
  }
}

</mosaic_0001>

<bundles_post_ra>
// kernel: tpu_custom_call.1
= control target key start
LH: loop header
LB: loop body
LE: loop exit
PB: predicated region body
PF: predicated region fallthrough
CT: control target
= control target key end

     0   :  { %s125_s0 = inlined_call_operand.hbm [shape: f32[8,32], index: 0, kind: input, shape index: {}]   ;;  %s126_s1 = inlined_call_operand.vmem [shape: f32[1,32], index: 1, kind: input, shape index: {}]   ;;  %s127_s2 = inlined_call_operand.<no memory space> [shape: f32[1,1], index: 2, kind: input, shape index: {}]   ;;  %s128_s3 = inlined_call_operand.vmem [shape: f32[8,1], index: 3, kind: output, shape index: {}]  }
   0x1   :  { %v8_v0 = vstv %s127_s2 }
   0x2   :  { %9 = vst [vmem:[#allocation2] sm:$0x1] %v8_v0 }
   0x3   :  { %10 = vsyncpa [#allocation4], 0  ;;  %s83_s14 = smov [#allocation3]   ;;  %s59_s18 = scalar_lea.hbm %s125_s0, 128 }
   0x4   :  { %s17_s15 = sshll.u32 %s83_s14, 4  ;;  %p60_p0 = scmp.ne.s32.totalorder %s125_s0, %s59_s18  ;;  %s18_s15 = int_to_ptr.vmem [resolvable:$true] %s17_s15 }
   0x5   :  { %p63_p1 = scmp.lt.u32.totalorder %s59_s18, %s125_s0 }
   0x7   :  { %p65_p2 = pnand %p63_p1, %p60_p0 }
   0x9   :  { %68 = shalt.err (!%p65_p2)
}
   0xa   :  { %s69_s2 = scalar_lea.vmem %s18_s15, 128  ;;  %p74_p4 = scmp.lt.s32.totalorder %s18_s15, %s18_s15 }
   0xb   :  { %p70_p3 = scmp.ne.s32.totalorder %s18_s15, %s69_s2  ;;  %p75_p5 = scmp.lt.s32.totalorder %s69_s2, %s69_s2 }
   0xd   :  { %p76_p6 = por %p75_p5, %p74_p4 }
   0xf   :  { %p77_p7 = pnand %p76_p6, %p70_p3 }
  0x11   :  { %80 = shalt.err (!%p77_p7)
}
  0x12   :  { %20 = dma.hbm_to_vmem [thread:$0]  %s125_s0, 128, %s18_s15, [#allocation4]  }
  0x13   :  { %81 = dma.done.wait [#allocation4], 128  }
  0x14   :  { %82 = vsyncadd [#allocation4], 4294967168  ;;  %v28_v1 = vld [vmem:[#allocation3] sm:$0xff]  ;;  %v56_v2 = vld [vmem:[%s126_s1] ss:$0 sm:$0xff]  ;;  %vm37_vm0 = vcmask 261120  }
  0x15   :  { %v36_v3 = vmul.f32 %v56_v2, %v28_v1  ;;  %v57_v5 = vld [vmem:[#allocation2] ss:$0 sm:$0xff]  ;;  %vm49_vm1 = vcmask 7168  }
  0x17   :  { %v38_v4 = vsel %vm37_vm0, %v36_v3, 0.0 }
  0x18   :  { %39 = vadd.xlane.f32.xlu0 %v38_v4 }
  0xa5   :  { %v40_v6 = vpop.xlane.xlu0 %39 }
  0xa6   :  { %v48_v7 = vadd.f32 %v57_v5, %v40_v6 }
  0xa8   :  { %50 = vst.msk [vmem:[%s128_s3] sm:$0xff] %vm49_vm1, %v48_v7 }
  0xa9   :  { %55 = vsyncpa [#allocation4], 1 }

</bundles_post_ra>
